<compile_context>
chip_gen: v7x
topology: tpu7x:2x2x1
jax: 0.10.0
libtpu: 0.0.40
codegen_flags: <defaults>
</compile_context>

<pallas_src>
import jax
import jax.numpy as jnp
from jax.experimental import pallas as pl
from jax.experimental.pallas import tpu as pltpu

_MIB = 1024 * 1024


def _expand_kernel(x_ref, o_ref):
    # x_ref: (tile_h, W, C)    channels-last pixel rows; channels ordered (i, j, co)
    # o_ref: (tile_h, s, W, L) with L = s * (C // s**2); lanes ordered (j, co)
    # out[h, i, w, :] = x[h, w, i*L:(i+1)*L]   -- static contiguous lane slices,
    # tile-aligned stores on a non-minor axis for any W.
    s = o_ref.shape[1]
    L = o_ref.shape[3]
    for i in range(s):
        o_ref[:, i, :, :] = x_ref[:, :, i * L:(i + 1) * L]
    # TODO(synk): dedicated small-L path (fold W into the lane axis + XLU
    # interleave) when L < 128; the generic path is correct but lane-sparse.


def _vmem_capacity_bytes():
    try:
        info = pltpu.get_tpu_info()
        cap = getattr(info, "vmem_capacity_bytes", None)
        if cap:
            return int(cap)
    except Exception:
        pass
    return 64 * _MIB  # conservative default (v7x per-core VMEM)


def _round_up(x, m):
    return (x + m - 1) // m * m


def _padded_vmem_bytes(rows, sub, lanes, itemsize):
    # VMEM blocks tile the minor two dims to (32/itemsize, 128).
    sub_mult = 32 // itemsize
    return rows * _round_up(max(sub, 1), sub_mult) * _round_up(max(lanes, 1), 128) * itemsize


def _pick_tile_h(N, H, W, C, s, L, itemsize):
    # Padded VMEM cost of one input h-row and one output h-row.
    in_per_h = _padded_vmem_bytes(1, W, C, itemsize)
    out_per_h = _padded_vmem_bytes(s, W, L, itemsize)
    per_h = max(in_per_h, out_per_h)

    # Generation-aware per-side block budget: ~8 MiB/side on v5e/v6e (128 MiB
    # VMEM), ~6 MiB/side on v7x (64 MiB VMEM) so the double-buffered working
    # set stays well under 32 MiB.
    vmem_cap = _vmem_capacity_bytes()
    per_side_budget = 8 * _MIB if vmem_cap >= 96 * _MIB else 6 * _MIB
    th = max(1, per_side_budget // per_h)

    # Enough grid steps to feed both v7x TensorCores and double-buffer DMAs.
    min_steps = 8
    needed_h_steps = pl.cdiv(min_steps, N)
    th = min(th, max(1, H // needed_h_steps), H)

    # Balanced cdiv grid: near-equal tiles, ragged trailing block allowed.
    th = pl.cdiv(H, pl.cdiv(H, th))
    return int(th), in_per_h, out_per_h


def expand_nhwc_pallas(x_nhwc, gain=2, *, tile_h=None):
    """Depth-to-space, channels-last fast path: 1 HBM read + 1 HBM write.

    x_nhwc: (N, H, W, C), C % gain**2 == 0, channels ordered (i, j, co) -- i.e.
    the channels-last image of the PyTorch NCHW input.
    Returns (N, H*gain, W*gain, C // gain**2).
    """
    N, H, W, C = x_nhwc.shape
    s = int(gain)
    if s < 1:
        raise ValueError(f"gain must be >= 1, got {gain}")
    if C % (s * s) != 0:
        raise ValueError(f"C={C} must be divisible by gain**2={s * s}")
    c = C // (s * s)
    L = s * c                         # output lane axis = (j, co)
    itemsize = jnp.dtype(x_nhwc.dtype).itemsize

    auto_th, in_per_h, out_per_h = _pick_tile_h(N, H, W, C, s, L, itemsize)
    th = int(tile_h) if tile_h is not None else auto_th
    if not (1 <= th <= H):
        raise ValueError(f"tile_h={th} must be in [1, {H}]")
    grid = (N, pl.cdiv(H, th))        # trailing H block may be ragged (masked)

    vmem_limit = int(min(100 * _MIB,
                         max(32 * _MIB, 2 * th * (in_per_h + out_per_h) + 8 * _MIB)))

    y5 = pl.pallas_call(
        _expand_kernel,
        out_shape=jax.ShapeDtypeStruct((N, H, s, W, L), x_nhwc.dtype),
        grid=grid,
        in_specs=[pl.BlockSpec((None, th, W, C), lambda n, t: (n, t, 0, 0))],
        out_specs=pl.BlockSpec((None, th, s, W, L), lambda n, t: (n, t, 0, 0, 0)),
        compiler_params=pltpu.CompilerParams(
            dimension_semantics=("parallel", "parallel"),
            vmem_limit_bytes=vmem_limit),
    )(x_nhwc)

    # Free (contiguous) view: (N, H, s, W, s*c) -> (N, H*s, W*s, c).
    return y5.reshape(N, H * s, W * s, c)


def expand_pallas(x_nchw, gain=2, *, tile_h=None):
    """PyTorch `Expand` forward (NCHW in / NCHW out) backed by the Pallas kernel.

    The two jnp.transpose calls are pure layout plumbing (XLA); the
    depth-to-space permutation itself runs in the Pallas kernel.  Channels-last
    pipelines should call expand_nhwc_pallas directly and avoid them.
    """
    # TODO(synk): fold the NCHW channel gather into the kernel's input BlockSpec
    # (per-block in-VMEM transpose) so NCHW callers also hit the 2-pass minimum.
    x_nhwc = jnp.transpose(x_nchw, (0, 2, 3, 1))
    y_nhwc = expand_nhwc_pallas(x_nhwc, gain=gain, tile_h=tile_h)
    return jnp.transpose(y_nhwc, (0, 3, 1, 2))


def expand_reference(x_nchw, gain=2):
    """Exact JAX mirror of the PyTorch module (view / permute / view)."""
    N, C, H, W = x_nchw.shape
    s = gain
    x = x_nchw.reshape(N, s, s, C // s**2, H, W)
    x = jnp.transpose(x, (0, 3, 4, 1, 5, 2))
    return x.reshape(N, C // s**2, H * s, W * s)


def _check(x, gain, tile_h=None):
    out = jax.block_until_ready(expand_pallas(x, gain=gain, tile_h=tile_h))
    ref = jax.block_until_ready(expand_reference(x, gain=gain))
    if out.shape != ref.shape:
        raise AssertionError(f"shape mismatch: {out.shape} vs {ref.shape}")
    if not bool(jnp.array_equal(out, ref)):
        err = float(jnp.max(jnp.abs(out.astype(jnp.float32) -
                                    ref.astype(jnp.float32))))
        raise AssertionError(f"value mismatch vs reference; max abs err = {err}")


if __name__ == "__main__":
    key = jax.random.PRNGKey(0)
    k1, k2, k3, k4 = jax.random.split(key, 4)

    # Module-default toy shape (gain=2, C % 4 == 0).
    x_small = jax.random.normal(k1, (2, 4, 16, 16), jnp.float32)
    _check(x_small, gain=2)
    _check(x_small, gain=2, tile_h=4)          # multi-step spatial grid

    # Lane-dense bf16 case (C=256, gain=2 -> L=128), run natively (no packing).
    x_big = jax.random.normal(k2, (2, 256, 8, 8), jnp.float32).astype(jnp.bfloat16)
    _check(x_big, gain=2)

    # gain=4 sanity check (C=32 -> c=2, small-L generic path).
    x_g4 = jax.random.normal(k3, (1, 32, 8, 8), jnp.float32)
    _check(x_g4, gain=4)

    # Awkward spatial size: ragged trailing H block via the cdiv grid.
    x_rag = jax.random.normal(k4, (1, 8, 11, 12), jnp.float32)
    _check(x_rag, gain=2, tile_h=4)

    print("KERNEL_OK")
</pallas_src>

<mosaic_0001>
module attributes {stable_mosaic.version = 11 : i64} {
  func.func @_expand_kernel(%arg0: i32, %arg1: i32, %arg2: memref<1x4x16x4xf32, #tpu.memory_space<vmem>>, %arg3: memref<1x4x2x16x2xf32, #tpu.memory_space<vmem>>) attributes {dimension_semantics = [#tpu.dimension_semantics<parallel>, #tpu.dimension_semantics<parallel>], iteration_bounds = array<i64: 2, 4>, scalar_prefetch = 0 : i64, scratch_operands = 0 : i64, tpu.core_type = #tpu.core_type<tc>, window_params = [{transform_indices = @transform_0, window_bounds = array<i64: 1, 4, 16, 4>}, {transform_indices = @transform_1, window_bounds = array<i64: 1, 4, 2, 16, 2>}]} {
    %c0 = arith.constant 0 : index
    %c0_0 = arith.constant 0 : index
    %c0_1 = arith.constant 0 : index
    %c0_2 = arith.constant 0 : index
    %0 = vector.load %arg2[%c0, %c0_0, %c0_1, %c0_2] : memref<1x4x16x4xf32, #tpu.memory_space<vmem>>, vector<1x4x16x2xf32>
    %1 = vector.shape_cast %0 : vector<1x4x16x2xf32> to vector<4x16x2xf32>
    %c0_3 = arith.constant 0 : index
    %c0_4 = arith.constant 0 : index
    %c0_5 = arith.constant 0 : index
    %c0_6 = arith.constant 0 : index
    %c0_7 = arith.constant 0 : index
    %2 = vector.load %arg3[%c0_3, %c0_4, %c0_5, %c0_6, %c0_7] : memref<1x4x2x16x2xf32, #tpu.memory_space<vmem>>, vector<1x4x1x16x2xf32>
    %3 = vector.shape_cast %2 : vector<1x4x1x16x2xf32> to vector<4x16x2xf32>
    %4 = vector.shape_cast %1 : vector<4x16x2xf32> to vector<1x4x1x16x2xf32>
    tpu.vector_store %arg3[%c0_3, %c0_4, %c0_5, %c0_6, %c0_7], %4 {strides = array<i32>} : memref<1x4x2x16x2xf32, #tpu.memory_space<vmem>>, vector<1x4x1x16x2xf32>,
    %c0_8 = arith.constant 0 : index
    %c0_9 = arith.constant 0 : index
    %c0_10 = arith.constant 0 : index
    %c2 = arith.constant 2 : index
    %5 = vector.load %arg2[%c0_8, %c0_9, %c0_10, %c2] : memref<1x4x16x4xf32, #tpu.memory_space<vmem>>, vector<1x4x16x2xf32>
    %6 = vector.shape_cast %5 : vector<1x4x16x2xf32> to vector<4x16x2xf32>
    %c0_11 = arith.constant 0 : index
    %c0_12 = arith.constant 0 : index
    %c1 = arith.constant 1 : index
    %c0_13 = arith.constant 0 : index
    %c0_14 = arith.constant 0 : index
    %7 = vector.load %arg3[%c0_11, %c0_12, %c1, %c0_13, %c0_14] : memref<1x4x2x16x2xf32, #tpu.memory_space<vmem>>, vector<1x4x1x16x2xf32>
    %8 = vector.shape_cast %7 : vector<1x4x1x16x2xf32> to vector<4x16x2xf32>
    %9 = vector.shape_cast %6 : vector<4x16x2xf32> to vector<1x4x1x16x2xf32>
    tpu.vector_store %arg3[%c0_11, %c0_12, %c1, %c0_13, %c0_14], %9 {strides = array<i32>} : memref<1x4x2x16x2xf32, #tpu.memory_space<vmem>>, vector<1x4x1x16x2xf32>,
    return
  }
  func.func @transform_0(%arg0: i32, %arg1: i32) -> (i32, i32, i32, i32) {
    %c0_i32 = arith.constant 0 : i32
    %c0_i32_0 = arith.constant 0 : i32
    %c0_i32_1 = arith.constant 0 : i32
    return %arg0, %arg1, %c0_i32, %c0_i32_0 : i32, i32, i32, i32
  }
  func.func @transform_1(%arg0: i32, %arg1: i32) -> (i32, i32, i32, i32, i32) {
    %c0_i32 = arith.constant 0 : i32
    %c0_i32_0 = arith.constant 0 : i32
    %c0_i32_1 = arith.constant 0 : i32
    %c0_i32_2 = arith.constant 0 : i32
    return %arg0, %arg1, %c0_i32, %c0_i32_0, %c0_i32_1 : i32, i32, i32, i32, i32
  }
}

</mosaic_0001>

<bundles_post_ra>
// kernel: tpu_custom_call.1
= control target key start
LH: loop header
LB: loop body
LE: loop exit
PB: predicated region body
PF: predicated region fallthrough
CT: control target
= control target key end

     0   :  { %s441_s6 = smov 0   ;;  %s443_s7 = smov 0   ;;  %s526_s0 = inlined_call_operand.vmem [shape: f32[2,16,16,4], index: 0, kind: input, shape index: {}]   ;;  %s527_s1 = inlined_call_operand.vmem [shape: f32[2,16,2,16,2], index: 1, kind: output, shape index: {}]  }
   0x1   :  { %s445_s8 = smov 0   ;;  %s447_s9 = smov 0  }
   0x2   :  { %s449_s10 = smov 0  }
   0x3 LB: > { %s20_s11 = sadd.s32 1, %s420_s8  ;;  %s23_s12 = sadd.s32 1, %s424_s9  ;;  %s428_s10 = sphi %s449_s10, %s11_s10   ;;  %s424_s9 = sphi %s447_s9, %s531_s9   ;;  %s420_s8 = sphi %s445_s8, %s530_s8   ;;  %s416_s7 = sphi %s443_s7, %s529_s7   ;;  %s412_s6 = sphi %s441_s6, %s528_s6  }
   0x4   : > { %p21_p0 = scmp.ge.s32.totalorder %s20_s11, 4  ;;  %p330_p1 = scmp.ge.s32.totalorder %s428_s10, 1 }
   0x5   : > { %p109_p2 = scmp.lt.s32.totalorder %s428_s10, 9 }
   0x6   : > { %s533_s11 = smov (%p21_p0, %s20_s11), 0  ;;  %s535_s12 = smov (!%p21_p0, %s23_s12), %s424_s9 }
   0x7   : > { %p110_p3 = pnand %p330_p1, %p109_p2  ;;  %p25_p4 = scmp.ge.s32.totalorder %s535_s12, 2 }
   0x8   : > { %s331_s13 = sshll.u32 (!%p110_p3), %s412_s6, 2  ;;  %p140_p5 = scmp.lt.s32.totalorder (!%p110_p3), %s416_s7, 1  ;;  %vm169_vm0 = vcmask (!%p110_p3), 15360  }
   0x9   : > { %s537_s12 = smov (%p25_p4, %s535_s12), 0  ;;  %113 = sbr.rel (%p110_p3) target bundleno = 153 (0x99), region = 24 }
   0xa   : > { %p142_p6 = scmp.lt.s32.totalorder (!%p110_p3), %s331_s13, 15  ;;  %s430_s28 = smov (!%p110_p3), 126  }
  0x10   : > { %s539_s7 = smov (!%p140_p5, %s416_s7), 1  ;;  %s541_s13 = smov (!%p142_p6, %s331_s13), 15 }
  0x11   : > { %s333_s14 = sshll.u32 %s539_s7, 5  ;;  %s337_s15 = sshll.u32 %s539_s7, 6 }
  0x12   : > { %s332_s16 = sshll.u32 %s541_s13, 1  ;;  %s336_s17 = sshll.u32 %s541_s13, 2 }
  0x13   : > { %s146_s18 = sadd.s32 %s333_s14, %s332_s16  ;;  %s157_s19 = sadd.s32 %s337_s15, %s336_s17 }
  0x14   : > { %s334_s20 = sshll.u32 %s146_s18, 3  ;;  %s338_s21 = sshll.u32 %s157_s19, 3 }
  0x15   : > { %s148_s24 = scalar_lea.vmem %s526_s0, %s334_s20  ;;  %s477_s27 = scalar_lea.vmem %s527_s1, %s338_s21 }
  0x16   : > { %v180_v0 = vld [vmem:[%s148_s24 + $0x10] sm:$0xff]  ;;  %v161_v1 = vld [vmem:[%s148_s24] sm:$0xff]  ;;  %v162_v2 = vld [vmem:[%s148_s24 + $0x8] sm:$0xff] }
  0x17   : > { %198 = vrot.lane.b32.xlu1 %v180_v0, %s430_s28  ;;  %v164_v3 = vld [vmem:[%s148_s24 + $0x18] sm:$0xff]  ;;  %v165_v4 = vld [vmem:[%s148_s24 + $0x20] sm:$0xff]  ;;  %v166_v5 = vld [vmem:[%s148_s24 + $0x28] sm:$0xff] }
  0x18   : > { %170 = vst.msk [vmem:[%s477_s27] sm:$0xff] %vm169_vm0, %v161_v1  ;;  %171 = vst.msk [vmem:[%s477_s27 + $0x8] sm:$0xff] %vm169_vm0, %v162_v2  ;;  %v167_v6 = vld [vmem:[%s148_s24 + $0x30] sm:$0xff]  ;;  %v168_v7 = vld [vmem:[%s148_s24 + $0x38] sm:$0xff] }
  0x19   : > { %172 = vst.msk [vmem:[%s477_s27 + $0x20] sm:$0xff] %vm169_vm0, %v180_v0  ;;  %194 = vrot.lane.b32.xlu0 %v161_v1, %s430_s28  ;;  %173 = vst.msk [vmem:[%s477_s27 + $0x28] sm:$0xff] %vm169_vm0, %v164_v3 }
  0x1a   : > { %174 = vst.msk [vmem:[%s477_s27 + $0x40] sm:$0xff] %vm169_vm0, %v165_v4  ;;  %175 = vst.msk [vmem:[%s477_s27 + $0x48] sm:$0xff] %vm169_vm0, %v166_v5 }
  0x1b   : > { %176 = vst.msk [vmem:[%s477_s27 + $0x60] sm:$0xff] %vm169_vm0, %v167_v6  ;;  %177 = vst.msk [vmem:[%s477_s27 + $0x68] sm:$0xff] %vm169_vm0, %v168_v7  ;;  %200 = vrot.lane.b32.xlu1 %v164_v3, %s430_s28 }
  0x1d   : > { %196 = vrot.lane.b32.xlu0 %v162_v2, %s430_s28 }
  0x1f   : > { %204 = vrot.lane.b32.xlu1 %v166_v5, %s430_s28 }
  0x21   : > { %202 = vrot.lane.b32.xlu0 %v165_v4, %s430_s28 }
  0x23   : > { %208 = vrot.lane.b32.xlu1 %v168_v7, %s430_s28 }
  0x25   : > { %206 = vrot.lane.b32.xlu0 %v167_v6, %s430_s28 }
  0x89   : > { %v199_v8 = vpop.permute.xlu1 %198 }
  0x8a   : > { %341 = vst.msk [vmem:[%s477_s27 + $0x30] sm:$0xff] %vm169_vm0, %v199_v8 }
  0x8b   : > { %v195_v9 = vpop.permute.xlu0 %194 }
  0x8c   : > { %339 = vst.msk [vmem:[%s477_s27 + $0x10] sm:$0xff] %vm169_vm0, %v195_v9 }
  0x8d   : > { %v201_v10 = vpop.permute.xlu1 %200 }
  0x8e   : > { %342 = vst.msk [vmem:[%s477_s27 + $0x38] sm:$0xff] %vm169_vm0, %v201_v10 }
  0x8f   : > { %v197_v11 = vpop.permute.xlu0 %196 }
  0x90   : > { %340 = vst.msk [vmem:[%s477_s27 + $0x18] sm:$0xff] %vm169_vm0, %v197_v11 }
  0x91   : > { %v205_v12 = vpop.permute.xlu1 %204 }
  0x92   : > { %344 = vst.msk [vmem:[%s477_s27 + $0x58] sm:$0xff] %vm169_vm0, %v205_v12 }
  0x93   : > { %v203_v13 = vpop.permute.xlu0 %202 }
  0x94   : > { %343 = vst.msk [vmem:[%s477_s27 + $0x50] sm:$0xff] %vm169_vm0, %v203_v13 }
  0x95   : > { %v209_v14 = vpop.permute.xlu1 %208 }
  0x96   : > { %346 = vst.msk [vmem:[%s477_s27 + $0x78] sm:$0xff] %vm169_vm0, %v209_v14 }
  0x97   : > { %v207_v15 = vpop.permute.xlu0 %206 }
  0x98   : > { %345 = vst.msk [vmem:[%s477_s27 + $0x70] sm:$0xff] %vm169_vm0, %v207_v15 }
  0x99 PF: > { %s11_s10 = sadd.s32 1, %s428_s10   ;;  %s528_s6 = smov %s420_s8 }
  0x9a   : > { %p8_p7 = scmp.ge.s32.totalorder %s11_s10, 10   ;;  %s529_s7 = smov %s424_s9 }
  0x9b   : > { %s530_s8 = smov %s533_s11  ;;  %s531_s9 = smov %s537_s12 }
  0x9c   :  { %10 = sbr.rel (!%p8_p7) target bundleno = 3 (0x3), region = 55 }

</bundles_post_ra>
